<compile_context>
chip_gen: v5e
topology: v5e:2x2
jax: 0.10.0
libtpu: 0.0.40
codegen_flags: <defaults>
</compile_context>

<pallas_src>
import jax
import jax.numpy as jnp
from jax.experimental import pallas as pl
from jax.experimental.pallas import tpu as pltpu

EPS = 1e-6  # GroupNorm(eps=1e-06)


# ---------------------------------------------------------------------------
# VMEM budgeting (generation-aware)
# ---------------------------------------------------------------------------
def _vmem_budgets():
    """Returns (vmem_limit_bytes, usable_block_bytes) derived from physical VMEM."""
    try:
        cap = int(pltpu.get_tpu_info().vmem_capacity_bytes)
    except Exception:
        cap = 64 * 1024 * 1024  # conservative default (v7x-class per-core VMEM)
    if cap <= 0:
        cap = 64 * 1024 * 1024
    cap = min(cap, 128 * 1024 * 1024)
    # ~48 MiB on 64 MiB parts (v7x), ~96 MiB on 128 MiB parts (v5e/v6e).
    vmem_limit = max(min(cap * 3 // 4, 100 * 1024 * 1024), 24 * 1024 * 1024)
    usable = vmem_limit * 13 // 20  # headroom for compiler scratch / misc
    return vmem_limit, usable


def _padded_param_bytes(c, n_params=2, n_buffers=2):
    # A (1, C, 1, 1) block pads its trailing (1, 1) dims to (8, 128) -> C * 4 KiB per buffer.
    return n_params * n_buffers * c * 8 * 128 * 4


def _pick_time_tile(T, frame_elems, max_block_elems, min_blocks=1):
    """Largest time tile (multiple of 8, or T itself) fitting the element budget, with at least
    `min_blocks` blocks along T when that is representable."""
    fit = max(max_block_elems // max(frame_elems, 1), 1)
    tt = min(T, fit)
    if min_blocks > 1:
        tt = min(tt, pl.cdiv(T, min_blocks))
    if tt >= T:
        return T
    tt = max((tt // 8) * 8, 8)
    return T if tt >= T else tt


def _pick_row_tile(rows, max_rows):
    """Row tile for the chunked group-stats kernel: a multiple of 8 that divides `rows` (exact
    chunks keep the streamed statistics exact), as large as fits the budget."""
    if rows <= max_rows:
        return rows
    best_fit, smallest = None, None
    for r in range(8, rows, 8):
        if rows % r == 0:
            if smallest is None:
                smallest = r
            if r <= max_rows:
                best_fit = r
    if best_fit is not None:
        return best_fit
    if smallest is not None:
        return smallest
    return rows  # rows not a multiple of 8: fall back to a single full chunk


# ---------------------------------------------------------------------------
# Kernels
# ---------------------------------------------------------------------------
def _gn1_kernel(x_ref, g_ref, b_ref, o_ref):
    """GroupNorm(num_groups=1) applied per time frame.

    x_ref: (1, C, Tt, HW); per-frame stats reduce over (C, HW) = axes (1, 3).
    g_ref / b_ref: (1, C, 1, 1) f32 per-channel affine.
    Partial trailing T blocks are safe: frames are statistically independent and OOB output
    rows are masked on the store.
    """
    n = x_ref.shape[1] * x_ref.shape[3]
    inv_n = 1.0 / n
    # Pass 1: per-frame mean (the f32 copy of x need not stay live past this reduction).
    mean = jnp.sum(x_ref[...].astype(jnp.float32), axis=(1, 3), keepdims=True) * inv_n
    # Pass 2: centered sum of squares (two-pass variance; block is VMEM-resident so this is cheap).
    xc = x_ref[...].astype(jnp.float32) - mean
    var = jnp.sum(xc * xc, axis=(1, 3), keepdims=True) * inv_n
    inv = jax.lax.rsqrt(var + EPS)
    # Affine folded into the epilogue; (1,C,1,1)/(1,1,Tt,1) operands broadcast directly against
    # the (1,C,Tt,HW) tile (no (1,C,Tt,1) intermediates materialize).
    o_ref[...] = (xc * inv * g_ref[...] + b_ref[...]).astype(o_ref.dtype)


def _gng_fused_kernel(x_ref, g_ref, b_ref, o_ref):
    """GroupNorm(G>1) with the whole (b, g) slab resident: stats over (Cg, L) = axes (2, 3)."""
    n = x_ref.shape[2] * x_ref.shape[3]
    inv_n = 1.0 / n
    mean = jnp.sum(x_ref[...].astype(jnp.float32), axis=(2, 3), keepdims=True) * inv_n
    xc = x_ref[...].astype(jnp.float32) - mean
    var = jnp.sum(xc * xc, axis=(2, 3), keepdims=True) * inv_n
    inv = jax.lax.rsqrt(var + EPS)
    o_ref[...] = (xc * inv * g_ref[...] + b_ref[...]).astype(o_ref.dtype)


def _group_stats_kernel(x_ref, mean_ref, inv_ref, mean_s, m2_s):
    """Streamed per-(b, g) statistics over row chunks of the (Cg*T, HW) slab.

    x_ref: (1, 1, Rt, HW) chunk (Rt divides Cg*T so every chunk is fully valid).
    mean_ref / inv_ref: (1, 1, 1, 1) outputs written on the last chunk.
    mean_s / m2_s: (1, 1, 1, 1) f32 VMEM scratch holding the running (mean, M2); chunks are
    combined with the Chan/Welford formula so the variance stays two-pass-accurate while streaming.
    """
    l = pl.program_id(2)
    nl = pl.num_programs(2)

    @pl.when(l == 0)
    def _():
        mean_s[...] = jnp.zeros_like(mean_s)
        m2_s[...] = jnp.zeros_like(m2_s)

    x = x_ref[...].astype(jnp.float32)
    n_c = float(x.shape[2] * x.shape[3])
    mean_c = jnp.sum(x, axis=(2, 3), keepdims=True) * (1.0 / n_c)      # (1,1,1,1)
    d = x - mean_c
    m2_c = jnp.sum(d * d, axis=(2, 3), keepdims=True)                  # (1,1,1,1)

    n_a = l.astype(jnp.float32) * n_c
    n_ab = n_a + n_c
    mean_a = mean_s[...]
    delta = mean_c - mean_a
    mean_ab = mean_a + delta * (n_c / n_ab)
    m2_ab = m2_s[...] + m2_c + (delta * delta) * (n_a * n_c / n_ab)
    mean_s[...] = mean_ab
    m2_s[...] = m2_ab

    @pl.when(l == nl - 1)
    def _():
        var = m2_ab / (n_c * nl)
        mean_ref[...] = mean_ab
        inv_ref[...] = jax.lax.rsqrt(var + EPS)


def _affine_kernel(x_ref, s_ref, b_ref, o_ref):
    """y = x * scale + bias with per-(batch, channel) f32 scale/bias blocks of shape (1, C, 1, 1)."""
    o_ref[...] = (x_ref[...].astype(jnp.float32) * s_ref[...] + b_ref[...]).astype(o_ref.dtype)


# ---------------------------------------------------------------------------
# Wrapper
# ---------------------------------------------------------------------------
def causal_normalize(x, gamma, beta, num_groups=1, *, _force_group_chunking=False):
    """Forward pass of CausalNormalize. x: (B, C, T, H, W); gamma, beta: (C,)."""
    B, C, T, H, W = x.shape
    HW = H * W
    dtype = x.dtype
    itemsize = jnp.dtype(dtype).itemsize
    vmem_limit, usable = _vmem_budgets()

    if num_groups == 1:
        # time2batch + GroupNorm(1, C) + batch2time == per-(b, t) normalization over (C, H, W).
        # No wrapper transposes: view as (B, C, T, HW) and reduce over (C, HW) inside the kernel.
        x4 = x.reshape(B, C, T, HW)
        g4 = gamma.reshape(1, C, 1, 1).astype(jnp.float32)
        b4 = beta.reshape(1, C, 1, 1).astype(jnp.float32)

        # f32 working set per element: 2 in bufs + 2 out bufs + ~3 blocks of f32 temps; the
        # (8,128)-padded gamma/beta buffers are charged against the budget too.
        per_elem = 4 * itemsize + 12
        max_block_elems = max((usable - _padded_param_bytes(C)) // per_elem, 1)
        min_t_blocks = 2 if (B < 2 and T > 8) else 1  # keep both v7x TensorCores fed
        Tt = _pick_time_tile(T, C * HW, max_block_elems, min_t_blocks)
        nt = pl.cdiv(T, Tt)

        cost = pl.CostEstimate(flops=8 * x.size, transcendentals=B * T,
                               bytes_accessed=2 * x.size * itemsize)
        y = pl.pallas_call(
            _gn1_kernel,
            out_shape=jax.ShapeDtypeStruct((B, C, T, HW), dtype),
            grid_spec=pltpu.PrefetchScalarGridSpec(
                num_scalar_prefetch=0,
                grid=(B, nt),
                in_specs=[
                    pl.BlockSpec((1, C, Tt, HW), lambda b, t: (b, 0, t, 0)),
                    pl.BlockSpec((1, C, 1, 1), lambda b, t: (0, 0, 0, 0)),
                    pl.BlockSpec((1, C, 1, 1), lambda b, t: (0, 0, 0, 0)),
                ],
                out_specs=pl.BlockSpec((1, C, Tt, HW), lambda b, t: (b, 0, t, 0)),
            ),
            compiler_params=pltpu.CompilerParams(
                dimension_semantics=("parallel", "parallel"),
                vmem_limit_bytes=vmem_limit),
            cost_estimate=cost,
        )(x4, g4, b4)
        return y.reshape(B, C, T, H, W)

    # ----- num_groups > 1: plain GroupNorm(G, C) on the 5-D tensor -----
    G = num_groups
    Cg = C // G
    L = T * HW
    slab_elems = Cg * L
    fused_param_bytes = 2 * 2 * (((Cg + 7) // 8) * 8) * 128 * 4
    fused_ws = slab_elems * (4 * itemsize + 12) + fused_param_bytes

    if not _force_group_chunking and fused_ws <= usable:
        # Small groups: one VMEM-resident block per (b, g), fully fused (2 HBM passes).
        x4 = x.reshape(B, G, Cg, L)
        g4 = gamma.reshape(1, G, Cg, 1).astype(jnp.float32)
        b4 = beta.reshape(1, G, Cg, 1).astype(jnp.float32)
        cost = pl.CostEstimate(flops=8 * x.size, transcendentals=B * G,
                               bytes_accessed=2 * x.size * itemsize)
        y = pl.pallas_call(
            _gng_fused_kernel,
            out_shape=jax.ShapeDtypeStruct((B, G, Cg, L), dtype),
            grid_spec=pltpu.PrefetchScalarGridSpec(
                num_scalar_prefetch=0,
                grid=(B, G),
                in_specs=[
                    pl.BlockSpec((1, 1, Cg, L), lambda b, g: (b, g, 0, 0)),
                    pl.BlockSpec((1, 1, Cg, 1), lambda b, g: (0, g, 0, 0)),
                    pl.BlockSpec((1, 1, Cg, 1), lambda b, g: (0, g, 0, 0)),
                ],
                out_specs=pl.BlockSpec((1, 1, Cg, L), lambda b, g: (b, g, 0, 0)),
            ),
            compiler_params=pltpu.CompilerParams(
                dimension_semantics=("parallel", "parallel"),
                vmem_limit_bytes=vmem_limit),
            cost_estimate=cost,
        )(x4, g4, b4)
        return y.reshape(B, C, T, H, W)

    # Large groups (or forced): chunked 2-call pipeline so VMEM never holds a whole (Cg, T*H*W)
    # slab. Total HBM traffic = 2 reads + 1 write (minimum possible once a group exceeds VMEM).
    rows = Cg * T
    xg = x.reshape(B, G, rows, HW)
    stats_per_row = HW * (2 * itemsize + 8)  # 2 in bufs + ~2 blocks of f32 temps
    max_rows = max(usable // max(stats_per_row, 1), 8)
    if _force_group_chunking:
        max_rows = min(max_rows, max(rows // 2, 8))  # guarantee >1 chunk so streaming is exercised
    Rt = _pick_row_tile(rows, max_rows)
    n_l = rows // Rt  # Rt always divides rows (or equals rows)

    mean_bg, inv_bg = pl.pallas_call(
        _group_stats_kernel,
        out_shape=(jax.ShapeDtypeStruct((B, G, 1, 1), jnp.float32),
                   jax.ShapeDtypeStruct((B, G, 1, 1), jnp.float32)),
        grid_spec=pltpu.PrefetchScalarGridSpec(
            num_scalar_prefetch=0,
            grid=(B, G, n_l),
            in_specs=[pl.BlockSpec((1, 1, Rt, HW), lambda b, g, l: (b, g, l, 0))],
            out_specs=[pl.BlockSpec((1, 1, 1, 1), lambda b, g, l: (b, g, 0, 0)),
                       pl.BlockSpec((1, 1, 1, 1), lambda b, g, l: (b, g, 0, 0))],
            scratch_shapes=[pltpu.VMEM((1, 1, 1, 1), jnp.float32),
                            pltpu.VMEM((1, 1, 1, 1), jnp.float32)],
        ),
        compiler_params=pltpu.CompilerParams(
            dimension_semantics=("parallel", "parallel", "arbitrary"),
            vmem_limit_bytes=vmem_limit),
        cost_estimate=pl.CostEstimate(flops=4 * x.size, transcendentals=B * G,
                                      bytes_accessed=x.size * itemsize),
    )(xg)

    # Fold per-(b, g) stats and the per-channel affine into per-(b, c) scale/bias (tiny XLA ops).
    inv_bc = jnp.broadcast_to(inv_bg.reshape(B, G, 1), (B, G, Cg)).reshape(B, C)
    mean_bc = jnp.broadcast_to(mean_bg.reshape(B, G, 1), (B, G, Cg)).reshape(B, C)
    scale = gamma.astype(jnp.float32).reshape(1, C) * inv_bc
    bias = beta.astype(jnp.float32).reshape(1, C) - mean_bc * scale
    scale4 = scale.reshape(B, C, 1, 1)
    bias4 = bias.reshape(B, C, 1, 1)

    x4 = x.reshape(B, C, T, HW)
    per_elem = 4 * itemsize + 8
    max_block_elems = max((usable - _padded_param_bytes(C)) // per_elem, 1)
    min_t_blocks = 2 if (B < 2 and T > 8) else 1
    Tt = _pick_time_tile(T, C * HW, max_block_elems, min_t_blocks)
    nt = pl.cdiv(T, Tt)
    y = pl.pallas_call(
        _affine_kernel,
        out_shape=jax.ShapeDtypeStruct((B, C, T, HW), dtype),
        grid_spec=pltpu.PrefetchScalarGridSpec(
            num_scalar_prefetch=0,
            grid=(B, nt),
            in_specs=[
                pl.BlockSpec((1, C, Tt, HW), lambda b, t: (b, 0, t, 0)),
                pl.BlockSpec((1, C, 1, 1), lambda b, t: (b, 0, 0, 0)),
                pl.BlockSpec((1, C, 1, 1), lambda b, t: (b, 0, 0, 0)),
            ],
            out_specs=pl.BlockSpec((1, C, Tt, HW), lambda b, t: (b, 0, t, 0)),
        ),
        compiler_params=pltpu.CompilerParams(
            dimension_semantics=("parallel", "parallel"),
            vmem_limit_bytes=vmem_limit),
        cost_estimate=pl.CostEstimate(flops=2 * x.size, transcendentals=0,
                                      bytes_accessed=2 * x.size * itemsize),
    )(x4, scale4, bias4)
    return y.reshape(B, C, T, H, W)


# ---------------------------------------------------------------------------
# Pure-JAX reference (torch GroupNorm semantics)
# ---------------------------------------------------------------------------
def _reference(x, gamma, beta, num_groups=1):
    B, C, T, H, W = x.shape
    if num_groups == 1:
        xbt = jnp.transpose(x, (0, 2, 1, 3, 4)).reshape(B * T, C * H * W)
        mean = xbt.mean(axis=1, keepdims=True)
        var = ((xbt - mean) ** 2).mean(axis=1, keepdims=True)
        xn = ((xbt - mean) / jnp.sqrt(var + EPS)).reshape(B * T, C, H, W)
        y = xn * gamma.reshape(1, C, 1, 1) + beta.reshape(1, C, 1, 1)
        return jnp.transpose(y.reshape(B, T, C, H, W), (0, 2, 1, 3, 4))
    G = num_groups
    xg = x.reshape(B, G, -1)
    mean = xg.mean(axis=2, keepdims=True)
    var = ((xg - mean) ** 2).mean(axis=2, keepdims=True)
    xn = ((xg - mean) / jnp.sqrt(var + EPS)).reshape(B, C, T, H, W)
    return xn * gamma.reshape(1, C, 1, 1, 1) + beta.reshape(1, C, 1, 1, 1)


if __name__ == "__main__":
    key = jax.random.PRNGKey(0)
    kx, kg, kb, kx2 = jax.random.split(key, 4)

    B, C, T, H, W = 2, 4, 8, 16, 16
    x = jax.random.normal(kx, (B, C, T, H, W), dtype=jnp.float32)
    gamma = 1.0 + 0.1 * jax.random.normal(kg, (C,), dtype=jnp.float32)
    beta = 0.1 * jax.random.normal(kb, (C,), dtype=jnp.float32)

    # Case 1: CausalNormalize default path (num_groups=1), fused per-frame normalization.
    out1 = jax.block_until_ready(causal_normalize(x, gamma, beta, num_groups=1))
    ref1 = _reference(x, gamma, beta, num_groups=1)
    assert out1.shape == (B, C, T, H, W)
    assert jnp.allclose(out1, ref1, atol=1e-4, rtol=1e-4), "mismatch (num_groups=1)"

    # Case 2: B=1 with T=12 -> forced >=2 T-blocks (v7x occupancy) and a masked partial block.
    x2 = jax.random.normal(kx2, (1, C, 12, H, W), dtype=jnp.float32)
    out2 = jax.block_until_ready(causal_normalize(x2, gamma, beta, num_groups=1))
    ref2 = _reference(x2, gamma, beta, num_groups=1)
    assert jnp.allclose(out2, ref2, atol=1e-4, rtol=1e-4), "mismatch (num_groups=1, partial block)"

    # Case 3: num_groups > 1, fused single-block-per-(b, g) path.
    out3 = jax.block_until_ready(causal_normalize(x, gamma, beta, num_groups=2))
    ref3 = _reference(x, gamma, beta, num_groups=2)
    assert jnp.allclose(out3, ref3, atol=1e-4, rtol=1e-4), "mismatch (num_groups=2, fused)"

    # Case 4: num_groups > 1, chunked (streamed stats + apply) pipeline forced at small shapes.
    out4 = jax.block_until_ready(
        causal_normalize(x, gamma, beta, num_groups=2, _force_group_chunking=True))
    assert jnp.allclose(out4, ref3, atol=1e-4, rtol=1e-4), "mismatch (num_groups=2, chunked)"

    print("KERNEL_OK")
</pallas_src>

<mosaic_0001>
module attributes {stable_mosaic.version = 11 : i64} {
  func.func @_gn1_kernel(%arg0: i32, %arg1: i32, %arg2: memref<1x4x8x256xf32, #tpu.memory_space<vmem>>, %arg3: memref<1x4x1x1xf32, #tpu.memory_space<vmem>>, %arg4: memref<1x4x1x1xf32, #tpu.memory_space<vmem>>, %arg5: memref<1x4x8x256xf32, #tpu.memory_space<vmem>>) attributes {dimension_semantics = [#tpu.dimension_semantics<parallel>, #tpu.dimension_semantics<parallel>], iteration_bounds = array<i64: 2, 1>, scalar_prefetch = 0 : i64, scratch_operands = 0 : i64, tpu.core_type = #tpu.core_type<tc>, window_params = [{transform_indices = @transform_0, window_bounds = array<i64: 1, 4, 8, 256>}, {pipeline_mode = #tpu.pipeline_mode<synchronous>, transform_indices = @transform_1, window_bounds = array<i64: 1, 4, 1, 1>}, {pipeline_mode = #tpu.pipeline_mode<synchronous>, transform_indices = @transform_2, window_bounds = array<i64: 1, 4, 1, 1>}, {transform_indices = @transform_3, window_bounds = array<i64: 1, 4, 8, 256>}]} {
    %c0 = arith.constant 0 : index
    %c0_0 = arith.constant 0 : index
    %c0_1 = arith.constant 0 : index
    %c0_2 = arith.constant 0 : index
    %0 = vector.load %arg2[%c0, %c0_0, %c0_1, %c0_2] : memref<1x4x8x256xf32, #tpu.memory_space<vmem>>, vector<1x4x8x256xf32>
    %cst = arith.constant dense<0.000000e+00> : vector<1x8xf32>
    %1 = vector.multi_reduction <add>, %0, %cst [1, 3] : vector<1x4x8x256xf32> to vector<1x8xf32>
    %2 = vector.shape_cast %1 : vector<1x8xf32> to vector<1x1x8x1xf32>
    %cst_3 = arith.constant 9.765625E-4 : f32
    %3 = vector.broadcast %cst_3 : f32 to vector<1x1x8x1xf32>
    %4 = arith.mulf %2, %3 : vector<1x1x8x1xf32>
    %c0_4 = arith.constant 0 : index
    %c0_5 = arith.constant 0 : index
    %c0_6 = arith.constant 0 : index
    %c0_7 = arith.constant 0 : index
    %5 = vector.load %arg2[%c0_4, %c0_5, %c0_6, %c0_7] : memref<1x4x8x256xf32, #tpu.memory_space<vmem>>, vector<1x4x8x256xf32>
    %6 = vector.broadcast %4 : vector<1x1x8x1xf32> to vector<1x4x8x256xf32>
    %7 = arith.subf %5, %6 : vector<1x4x8x256xf32>
    %8 = arith.mulf %7, %7 : vector<1x4x8x256xf32>
    %cst_8 = arith.constant dense<0.000000e+00> : vector<1x8xf32>
    %9 = vector.multi_reduction <add>, %8, %cst_8 [1, 3] : vector<1x4x8x256xf32> to vector<1x8xf32>
    %10 = vector.shape_cast %9 : vector<1x8xf32> to vector<1x1x8x1xf32>
    %cst_9 = arith.constant 9.765625E-4 : f32
    %11 = vector.broadcast %cst_9 : f32 to vector<1x1x8x1xf32>
    %12 = arith.mulf %10, %11 : vector<1x1x8x1xf32>
    %cst_10 = arith.constant 9.99999997E-7 : f32
    %13 = vector.broadcast %cst_10 : f32 to vector<1x1x8x1xf32>
    %14 = arith.addf %12, %13 : vector<1x1x8x1xf32>
    %15 = math.rsqrt %14 : vector<1x1x8x1xf32>
    %16 = vector.broadcast %15 : vector<1x1x8x1xf32> to vector<1x4x8x256xf32>
    %17 = arith.mulf %7, %16 : vector<1x4x8x256xf32>
    %c0_11 = arith.constant 0 : index
    %c0_12 = arith.constant 0 : index
    %c0_13 = arith.constant 0 : index
    %c0_14 = arith.constant 0 : index
    %18 = vector.load %arg3[%c0_11, %c0_12, %c0_13, %c0_14] : memref<1x4x1x1xf32, #tpu.memory_space<vmem>>, vector<1x4x1x1xf32>
    %19 = vector.broadcast %18 : vector<1x4x1x1xf32> to vector<1x4x8x256xf32>
    %20 = arith.mulf %17, %19 : vector<1x4x8x256xf32>
    %c0_15 = arith.constant 0 : index
    %c0_16 = arith.constant 0 : index
    %c0_17 = arith.constant 0 : index
    %c0_18 = arith.constant 0 : index
    %21 = vector.load %arg4[%c0_15, %c0_16, %c0_17, %c0_18] : memref<1x4x1x1xf32, #tpu.memory_space<vmem>>, vector<1x4x1x1xf32>
    %22 = vector.broadcast %21 : vector<1x4x1x1xf32> to vector<1x4x8x256xf32>
    %23 = arith.addf %20, %22 : vector<1x4x8x256xf32>
    %c0_19 = arith.constant 0 : index
    %c0_20 = arith.constant 0 : index
    %c0_21 = arith.constant 0 : index
    %c0_22 = arith.constant 0 : index
    %24 = vector.load %arg5[%c0_19, %c0_20, %c0_21, %c0_22] : memref<1x4x8x256xf32, #tpu.memory_space<vmem>>, vector<1x4x8x256xf32>
    tpu.vector_store %arg5[%c0_19, %c0_20, %c0_21, %c0_22], %23 {strides = array<i32>} : memref<1x4x8x256xf32, #tpu.memory_space<vmem>>, vector<1x4x8x256xf32>,
    return
  }
  func.func @transform_0(%arg0: i32, %arg1: i32) -> (i32, i32, i32, i32) {
    %c0_i32 = arith.constant 0 : i32
    %c0_i32_0 = arith.constant 0 : i32
    %c0_i32_1 = arith.constant 0 : i32
    return %arg0, %c0_i32, %arg1, %c0_i32_0 : i32, i32, i32, i32
  }
  func.func @transform_1(%arg0: i32, %arg1: i32) -> (i32, i32, i32, i32) {
    %c0_i32 = arith.constant 0 : i32
    %c0_i32_0 = arith.constant 0 : i32
    %c0_i32_1 = arith.constant 0 : i32
    %c0_i32_2 = arith.constant 0 : i32
    %c0_i32_3 = arith.constant 0 : i32
    return %c0_i32, %c0_i32_0, %c0_i32_1, %c0_i32_2 : i32, i32, i32, i32
  }
  func.func @transform_2(%arg0: i32, %arg1: i32) -> (i32, i32, i32, i32) {
    %c0_i32 = arith.constant 0 : i32
    %c0_i32_0 = arith.constant 0 : i32
    %c0_i32_1 = arith.constant 0 : i32
    %c0_i32_2 = arith.constant 0 : i32
    %c0_i32_3 = arith.constant 0 : i32
    return %c0_i32, %c0_i32_0, %c0_i32_1, %c0_i32_2 : i32, i32, i32, i32
  }
  func.func @transform_3(%arg0: i32, %arg1: i32) -> (i32, i32, i32, i32) {
    %c0_i32 = arith.constant 0 : i32
    %c0_i32_0 = arith.constant 0 : i32
    %c0_i32_1 = arith.constant 0 : i32
    return %arg0, %c0_i32, %arg1, %c0_i32_0 : i32, i32, i32, i32
  }
}

</mosaic_0001>

<bundles_post_ra>
// kernel: tpu_custom_call.1
= control target key start
LH: loop header
LB: loop body
LE: loop exit
PB: predicated region body
PF: predicated region fallthrough
CT: control target
= control target key end

     0   :  { %8 = vsyncpa [#allocation3], 0  ;;  %s841_s0 = inlined_call_operand.hbm [shape: f32[2,4,8,256], index: 0, kind: input, shape index: {}]   ;;  %s842_s1 = inlined_call_operand.vmem [shape: f32[1,4,1,1], index: 1, kind: input, shape index: {}]   ;;  %s843_s2 = inlined_call_operand.vmem [shape: f32[1,4,1,1], index: 2, kind: input, shape index: {}]   ;;  %s844_s3 = inlined_call_operand.hbm [shape: f32[2,4,8,256], index: 3, kind: output, shape index: {}]  }
   0x1   :  { %10 = vsyncpa [#allocation3 + $0x1], 0 }
   0x2   :  { %11 = vsyncpa [#allocation4], 0 }
   0x3   :  { %13 = vsyncpa [#allocation4 + $0x1], 0  ;;  %s693_s12 = smov 0   ;;  %s695_s13 = smov 0  }
   0x4   :  { %s697_s14 = smov 0   ;;  %s699_s15 = smov 0  }
   0x5   :  { %s701_s16 = smov 0   ;;  %s703_s17 = smov 0  }
   0x6 LB: > { %s457_s18 = sadd.s32 4294967295, %s666_s17   ;;  %s458_s19 = sadd.s32 4294967294, %s666_s17   ;;  %s666_s17 = sphi %s703_s17, %s19_s17   ;;  %s662_s16 = sphi %s701_s16, %s853_s16   ;;  %s658_s15 = sphi %s699_s15, %s852_s15   ;;  %s654_s14 = sphi %s697_s14, %s851_s14   ;;  %s650_s13 = sphi %s695_s13, %s850_s13   ;;  %s646_s12 = sphi %s693_s12, %s849_s12  }
   0x7   : > { %s31_s20 = sadd.s32 1, %s662_s16  ;;  %s40_s21 = sadd.s32 1, %s654_s14 }
   0x8   : > { %p33_p0 = scmp.ge.s32.totalorder %s31_s20, 2  ;;  %p47_p1 = scmp.ne.s32.totalorder %s654_s14, %s650_s13 }
   0x9   : > { %p48_p2 = scmp.eq.s32.totalorder %s666_s17, 0  ;;  %p53_p3 = scmp.ne.s32.totalorder %s650_s13, %s646_s12 }
   0xa   : > { %s855_s20 = smov (%p33_p0, %s31_s20), 0  ;;  %p54_p5 = scmp.eq.s32.totalorder %s457_s18, 0 }
   0xb   : > { %p734_p4 = por %p48_p2, %p47_p1  ;;  %s35_s23 = ssub.s32 %s662_s16, %s855_s20 }
   0xc   : > { %p121_p6 = scmp.eq.s32.totalorder %s457_s18, 1  ;;  %p38_p7 = scmp.eq.s32.totalorder %s35_s23, 0 }
   0xd   : > { %p740_p8 = por %p54_p5, %p53_p3  ;;  %p127_p10 = scmp.eq.s32.totalorder %s458_s19, 1 }
   0xe   : > { %p744_p9 = por %p121_p6, %p47_p1  ;;  %p460_p12 = scmp.ge.s32.totalorder %s666_s17, 2 }
   0xf   : > { %s749_s26 = scalar_select %p38_p7, %s654_s14, %s40_s21  }
  0x10   : > { %p751_p11 = por %p127_p10, %p53_p3  ;;  %p486_p13 = scmp.lt.s32.totalorder %s666_s17, 2 }
  0x11   : > { %s153_s28 = sand.u32 1, %s654_s14   ;;  %s472_s30 = sshll.u32 %s662_s16, 6 }
  0x12   : > { %s461_s29 = sshll.u32 %s153_s28, 6  ;;  %s164_s6 = scalar_lea.hbm %s841_s0, %s472_s30 }
  0x13   : > { %s157_s7 = scalar_lea.vmem [#allocation2], %s461_s29  ;;  %s165_s9 = sshll.u32 %s164_s6, 4  ;;  %s166_s9 = int_to_ptr.hbm [resolvable:$true] %s165_s9 }
  0x14   : > { %s167_s8 = sshll.u32 %s157_s7, 4  ;;  %p479_p0 = pnand %p486_p13, %p734_p4  ;;  %s168_s8 = int_to_ptr.vmem [resolvable:$true] %s167_s8 }
  0x15   : > { %p464_p1 = scmp.ge.s32.totalorder %s666_s17, 1  ;;  %s154_s10 = scalar_lea.sflag [#allocation3], %s153_s28 }
  0x16   : > { %s668_s11 = smov 256   ;;  %s669_s18 = smov 16  }
  0x17   : > { %481 = dma.hbm_to_vmem [thread:$0]  (!%p479_p0), %s166_s9, 1024, %s168_s8, %s154_s10, %s668_s11, %s668_s11, %s669_s18  }
  0x18   : > { %p175_p2 = scmp.lt.s32.totalorder %s666_s17, 3 }
  0x1a   : > { %p176_p3 = pnand %p464_p1, %p175_p2 }
  0x1b   : > { %s767_s19 = sand.u32 (!%p176_p3), 1, %s650_s13  }
  0x1c   : > { %179 = sbr.rel (%p176_p3) target bundleno = 340 (0x154), region = 32  ;;  %s465_s21 = sshll.u32 (!%p176_p3), %s767_s19, 6 }
  0x1d   : > { %s182_s23 = scalar_lea.sflag (!%p176_p3), [#allocation3], %s767_s19  ;;  %s185_s22 = scalar_lea.vmem (!%p176_p3), [#allocation2], %s465_s21 }
  0x21   : > { %637 = dma.done.wait (%p740_p8), %s182_s23, 1024  }
  0x22   : > { %639 = vsyncadd (%p740_p8), %s182_s23, 4294966272  ;;  %v670_v0 = vmov 0   ;;  %v209_v1 = vld [vmem:[%s185_s22] sm:$0xff]  ;;  %v210_v2 = vld [vmem:[%s185_s22 + $0x8] sm:$0xff]  ;;  %s473_s29 = sshll.u32 %s658_s15, 6  ;;  %s208_s15 = scalar_lea.vmem [#allocation5], %s465_s21 }
  0x23   : > { %541 = vset.pattern.permute.xlu1 %v670_v0  ;;  %542 = vset.pattern.permute.xlu2 %v670_v0  ;;  %v211_v3 = vld [vmem:[%s185_s22 + $0x10] sm:$0xff]  ;;  %v217_v4 = vadd.f32 %v210_v2, %v209_v1  ;;  %v212_v5 = vld [vmem:[%s185_s22 + $0x18] sm:$0xff]  ;;  %v213_v6 = vld [vmem:[%s185_s22 + $0x20] sm:$0xff]  ;;  %s366_s4 = scalar_lea.hbm %s844_s3, %s473_s29  ;;  %s367_s5 = sshll.u32 %s208_s15, 4  ;;  %s368_s5 = int_to_ptr.vmem [resolvable:$true] %s367_s5 }
  0x24   : > { %543 = vset.pattern.permute.xlu0 %v670_v0  ;;  %v544_v8 = vld [vmem:[%s842_s1] ss:$0 sm:$0xff]  ;;  %v214_v10 = vld [vmem:[%s185_s22 + $0x28] sm:$0xff]  ;;  %v215_v12 = vld [vmem:[%s185_s22 + $0x30] sm:$0xff]  ;;  %s369_s6 = sshll.u32 %s366_s4, 4  ;;  %s353_s7 = scalar_lea.sflag [#allocation4], %s767_s19  ;;  %s370_s6 = int_to_ptr.hbm [resolvable:$true] %s369_s6 }
  0x25   : > { %v218_v7 = vadd.f32 %v217_v4, %v211_v3  ;;  %285 = vperm.xlu1 %541, %v544_v8   ;;  %v216_v14 = vld [vmem:[%s185_s22 + $0x38] sm:$0xff]  ;;  %v545_v17 = vld [vmem:[%s842_s1 + $0x1] ss:$0 sm:$0xff]  ;;  %v547_v19 = vld [vmem:[%s843_s2 + $0x3] ss:$0 sm:$0xff]  ;;  %s598_s21 = sshra.s32 %s370_s6, 4  ;;  %s599_s21 = int_to_ptr.hbm [resolvable:$true] %s598_s21 }
  0x26   : > { %v546_v18 = vld [vmem:[%s843_s2 + $0x1] ss:$0 sm:$0xff]  ;;  %v548_v20 = vld [vmem:[%s842_s1 + $0x2] ss:$0 sm:$0xff]  ;;  %v549_v21 = vld [vmem:[%s842_s1 + $0x3] ss:$0 sm:$0xff]  ;;  %p605_p7 = scmp.lt.s32.totalorder %s599_s21, %s844_s3 }
  0x27   : > { %v219_v9 = vadd.f32 %v218_v7, %v212_v5  ;;  %293 = vperm.xlu2 %542, %v548_v20   ;;  %v551_v36 = vld [vmem:[%s843_s2 + $0x2] ss:$0 sm:$0xff]  ;;  %v550_v48 = vld [vmem:[%s843_s2] ss:$0 sm:$0xff]  ;;  %s600_s8 = scalar_lea.hbm %s599_s21, 64  ;;  %s604_s11 = scalar_lea.hbm %s844_s3, 128 }
  0x28   : > { %p601_p4 = scmp.ne.s32.totalorder %s599_s21, %s600_s8  ;;  %p606_p8 = scmp.lt.s32.totalorder %s604_s11, %s600_s8 }
  0x29   : > { %v220_v11 = vadd.f32 %v219_v9, %v213_v6 }
  0x2a   : > { %p602_p5 = pnand %p601_p4, %p744_p9  ;;  %p607_p10 = por %p606_p8, %p605_p7 }
  0x2b   : > { %v221_v13 = vadd.f32 %v220_v11, %v214_v10 }
  0x2c   : > { %p603_p6 = pneg %p602_p5 }
  0x2d   : > { %v222_v15 = vadd.f32 %v221_v13, %v215_v12  ;;  %289 = vperm.xlu1 %541, %v545_v17  }
  0x2e   : > { %p608_p13 = pnand %p607_p10, %p603_p6 }
  0x2f   : > { %v223_v16 = vadd.f32 %v222_v15, %v216_v14  ;;  %297 = vperm.xlu2 %542, %v549_v21  }
  0x31   : > { %224 = vadd.xlane.f32.xlu0 %v223_v16 }
  0x35   : > { %325 = vperm.xlu1 %541, %v546_v18  }
  0x37   : > { %329 = vperm.xlu2 %542, %v551_v36  }
  0x3d   : > { %333 = vperm.xlu1 %541, %v547_v19  }
  0x81   : > { %v294_v54 = vpop.permute.xlu2 %293 }
  0x89   : > { %v298_v61 = vpop.permute.xlu2 %297 }
  0x91   : > { %v330_v20 = vpop.permute.xlu2 %329 }
  0x97   : > { %v286_v49 = vpop.permute.xlu1 %285 }
  0x9f   : > { %v290_v53 = vpop.permute.xlu1 %289 }
  0xa4   : > { %v225_v22 = vpop.xlane.xlu0 %224 }
  0xa5   : > { %v226_v23 = vmul.f32 0.0009765625, %v225_v22 }
  0xa7   : > { %v227_v24 = vsub.f32 %v209_v1, %v226_v23  ;;  %v228_v25 = vsub.f32 %v210_v2, %v226_v23  ;;  %v229_v26 = vsub.f32 %v211_v3, %v226_v23  ;;  %v230_v27 = vsub.f32 %v212_v5, %v226_v23  ;;  %v326_v58 = vpop.permute.xlu1 %325 }
  0xa8   : > { %v231_v30 = vsub.f32 %v213_v6, %v226_v23  ;;  %v232_v33 = vsub.f32 %v214_v10, %v226_v23  ;;  %v233_v37 = vsub.f32 %v215_v12, %v226_v23  ;;  %v234_v40 = vsub.f32 %v216_v14, %v226_v23 }
  0xa9   : > { %v235_v28 = vmul.f32 %v227_v24, %v227_v24  ;;  %v236_v29 = vmul.f32 %v228_v25, %v228_v25  ;;  %v237_v31 = vmul.f32 %v229_v26, %v229_v26  ;;  %v238_v34 = vmul.f32 %v230_v27, %v230_v27 }
  0xaa   : > { %v239_v38 = vmul.f32 %v231_v30, %v231_v30  ;;  %v240_v41 = vmul.f32 %v232_v33, %v232_v33  ;;  %v241_v43 = vmul.f32 %v233_v37, %v233_v37  ;;  %v242_v45 = vmul.f32 %v234_v40, %v234_v40 }
  0xab   : > { %v243_v32 = vadd.f32 %v236_v29, %v235_v28 }
  0xad   : > { %v244_v35 = vadd.f32 %v243_v32, %v237_v31 }
  0xaf   : > { %v245_v39 = vadd.f32 %v244_v35, %v238_v34  ;;  %v334_v12 = vpop.permute.xlu1 %333 }
  0xb1   : > { %v246_v42 = vadd.f32 %v245_v39, %v239_v38 }
  0xb3   : > { %v247_v44 = vadd.f32 %v246_v42, %v240_v41 }
  0xb5   : > { %v248_v46 = vadd.f32 %v247_v44, %v241_v43 }
  0xb7   : > { %v249_v47 = vadd.f32 %v248_v46, %v242_v45 }
  0xb9   : > { %250 = vadd.xlane.f32.xlu0 %v249_v47 }
  0xcd   : > { %321 = vperm.xlu0 %543, %v550_v48  }
 0x12c   : > { %v251_v50 = vpop.xlane.xlu0 %250 }
 0x12d   : > { %v252_v51 = vmul.f32 0.0009765625, %v251_v50 }
 0x12f   : > { %v253_v52 = vadd.f32 1e-06, %v252_v51 }
 0x131   : > { %552 = vrsqrt.f32 %v253_v52  ;;  %vm260_vm1 = vweird.f32 %v253_v52 }
 0x137   : > { %v553_v55 = vpop.eup %552 }
 0x138   : > { %v255_v56 = vmul.f32 %v553_v55, %v253_v52  ;;  %vm261_vm0 = vweird.f32 %v553_v55 }
 0x139   : > { %vm262_vm2 = vmor %vm260_vm1, %vm261_vm0 }
 0x13a   : > { %v256_v57 = vmul.f32 %v553_v55, %v255_v56 }
 0x13c   : > { %v257_v59 = vmul.f32 0.5, %v256_v57 }
 0x13e   : > { %v258_v60 = vsub.f32 1.5, %v257_v59 }
 0x13f   : > { %v322_v22 = vpop.permute.xlu0 %321 }
 0x140   : > { %v259_v62 = vmul.f32 %v553_v55, %v258_v60 }
 0x142   : > { %v263_v63 = vsel %vm262_vm2, %v553_v55, %v259_v62 }
 0x143   : > { %v266_v0 = vmul.f32 %v263_v63, %v229_v26  ;;  %v267_v1 = vmul.f32 %v263_v63, %v230_v27  ;;  %v270_v2 = vmul.f32 %v263_v63, %v233_v37  ;;  %v271_v3 = vmul.f32 %v263_v63, %v234_v40 }
 0x144   : > { %v268_v4 = vmul.f32 %v263_v63, %v231_v30  ;;  %v269_v5 = vmul.f32 %v263_v63, %v232_v33  ;;  %v264_v6 = vmul.f32 %v263_v63, %v227_v24  ;;  %v265_v7 = vmul.f32 %v263_v63, %v228_v25 }
 0x145   : > { %v302_v8 = vmul.f32 %v290_v53, %v266_v0  ;;  %v303_v9 = vmul.f32 %v290_v53, %v267_v1  ;;  %v306_v10 = vmul.f32 %v298_v61, %v270_v2  ;;  %v307_v11 = vmul.f32 %v298_v61, %v271_v3 }
 0x146   : > { %v304_v13 = vmul.f32 %v294_v54, %v268_v4  ;;  %v305_v14 = vmul.f32 %v294_v54, %v269_v5  ;;  %v300_v18 = vmul.f32 %v286_v49, %v264_v6  ;;  %v301_v21 = vmul.f32 %v286_v49, %v265_v7 }
 0x147   : > { %v338_v15 = vadd.f32 %v326_v58, %v302_v8  ;;  %v339_v16 = vadd.f32 %v326_v58, %v303_v9  ;;  %v342_v17 = vadd.f32 %v334_v12, %v306_v10  ;;  %v343_v19 = vadd.f32 %v334_v12, %v307_v11 }
 0x148   : > { %v340_v23 = vadd.f32 %v330_v20, %v304_v13  ;;  %v341_v24 = vadd.f32 %v330_v20, %v305_v14  ;;  %v336_v25 = vadd.f32 %v322_v22, %v300_v18  ;;  %v337_v26 = vadd.f32 %v322_v22, %v301_v21 }
 0x149   : > { %346 = vst [vmem:[%s208_s15 + $0x10] sm:$0xff] %v338_v15 }
 0x14a   : > { %347 = vst [vmem:[%s208_s15 + $0x18] sm:$0xff] %v339_v16 }
 0x14b   : > { %350 = vst [vmem:[%s208_s15 + $0x30] sm:$0xff] %v342_v17 }
 0x14c   : > { %351 = vst [vmem:[%s208_s15 + $0x38] sm:$0xff] %v343_v19 }
 0x14d   : > { %348 = vst [vmem:[%s208_s15 + $0x20] sm:$0xff] %v340_v23 }
 0x14e   : > { %349 = vst [vmem:[%s208_s15 + $0x28] sm:$0xff] %v341_v24 }
 0x14f   : > { %344 = vst [vmem:[%s208_s15] sm:$0xff] %v336_v25 }
 0x150   : > { %345 = vst [vmem:[%s208_s15 + $0x8] sm:$0xff] %v337_v26 }
 0x151   : > { %611 = shalt.err (!%p608_p13)
}
 0x152   : > { %s671_s19 = smov 256   ;;  %s672_s22 = smov 16  }
 0x153   : > { %476 = dma.vmem_to_hbm [thread:$0]  (%p744_p9), %s368_s5, 1024, %s370_s6, %s353_s7, %s671_s19, %s671_s19, %s672_s22  }
 0x154 PF: > { %s384_s28 = sand.u32 1, %s646_s12   ;;  %p483_p0 = pnand %p460_p12, %p751_p11 }
 0x155   : > { %s385_s29 = scalar_lea.sflag [#allocation4], %s384_s28 }
 0x156   : > { %p484_p1 = pneg %p483_p0 }
 0x158   : > { %641 = dma.done.wait (%p484_p1), %s385_s29, 1024  }
 0x159   : > { %643 = vsyncadd (%p484_p1), %s385_s29, 4294966272  ;;  %s19_s17 = sadd.s32 1, %s666_s17   ;;  %s849_s12 = smov %s650_s13 }
 0x15a   : > { %p16_p2 = scmp.ge.s32.totalorder %s19_s17, 4   ;;  %s850_s13 = smov %s654_s14 }
 0x15b   : > { %s851_s14 = smov %s749_s26  ;;  %s852_s15 = smov %s662_s16 }
 0x15c   : > { %s853_s16 = smov %s855_s20  ;;  %18 = sbr.rel (!%p16_p2) target bundleno = 6 (0x6), region = 77 }
 0x161   :  { %391 = vsyncpa [#allocation3], 1 }
 0x162   :  { %393 = vsyncpa [#allocation3 + $0x1], 1 }
 0x163   :  { %394 = vsyncpa [#allocation4], 1 }
 0x164   :  { %396 = vsyncpa [#allocation4 + $0x1], 1 }

</bundles_post_ra>
